<compile_context>
chip_gen: v7x
topology: tpu7x:2x2x1
jax: 0.10.0
libtpu: 0.0.40
codegen_flags: <defaults>
</compile_context>

<pallas_src>
import functools

import jax
import jax.numpy as jnp
from jax.experimental import pallas as pl
from jax.experimental.pallas import tpu as pltpu

_MIB = 1024 * 1024


def _round_up(x: int, m: int) -> int:
    return ((x + m - 1) // m) * m


def _sublane_multiple(dtype) -> int:
    # Packed sublane tile: 8 rows for 4-byte, 16 for 2-byte, 32 for 1-byte dtypes.
    return {4: 8, 2: 16, 1: 32}.get(jnp.dtype(dtype).itemsize, 8)


def _vmem_capacity_bytes() -> int:
    try:
        return int(pltpu.get_tpu_info().vmem_capacity_bytes)
    except Exception:
        return 64 * _MIB  # conservative fallback = v7x physical VMEM per TensorCore


def _ce_partial_kernel(logits_ref, target_ref, out_ref, *, n_rows: int, block_rows: int):
    """Per-block partial sum of cross-entropy over rows of a (TM, C) logits tile."""
    i = pl.program_id(0)

    logits = logits_ref[...]                 # (TM, C), native dtype (f32 / bf16)
    tgt = target_ref[...]                    # (TM, 1) int32
    tm, c = logits.shape

    # Stable CE. Row max in the native dtype (max is exact), then upcast BEFORE
    # the subtraction so bf16 inputs don't round the shifted logits.
    row_max = jnp.max(logits, axis=-1, keepdims=True)
    shifted = logits.astype(jnp.float32) - row_max.astype(jnp.float32)   # (TM, C) f32

    sum_exp = jnp.sum(jnp.exp(shifted), axis=-1, keepdims=True)          # (TM, 1) f32

    # Target logit picked from the already-f32 `shifted` tensor; row_max cancels
    # in ce = lse - tgt_logit, so no second full-tile f32 temporary is needed.
    col_ids = jax.lax.broadcasted_iota(jnp.int32, (tm, c), 1)
    picked = jnp.sum(jnp.where(col_ids == tgt, shifted, 0.0),
                     axis=-1, keepdims=True)                             # (TM, 1) f32

    ce = jnp.log(sum_exp) - picked                                       # (TM, 1) f32

    # Mask rows past the true batch size. Keep this as a select (NOT ce * mask):
    # padded garbage rows may produce NaN/Inf and a multiply would propagate it.
    row_ids = i * block_rows + jax.lax.broadcasted_iota(jnp.int32, (tm, 1), 0)
    ce = jnp.where(row_ids < n_rows, ce, 0.0)

    partial = jnp.sum(ce)
    # Lane-dense (1, 1, 128) output block, one per grid step (unmasked vst).
    out_ref[...] = jnp.full(out_ref.shape, partial, dtype=jnp.float32)


def focal_loss(logits: jax.Array, target: jax.Array, gamma: float = 2.0,
               max_block_rows: int | None = None) -> jax.Array:
    """FocalLoss forward. logits: (N, C) float, target: (N,) int. Returns scalar f32."""
    n, c = logits.shape
    target2d = target.astype(jnp.int32).reshape(n, 1)

    itemsize = jnp.dtype(logits.dtype).itemsize
    bytes_per_row = c * itemsize
    sublane = _sublane_multiple(logits.dtype)
    n_pad = _round_up(n, sublane)

    # Generation-aware per-logits-buffer budget: 16 MiB on 128-MiB parts
    # (v5e/v6e), 8 MiB on v7x's 64-MiB VMEM. Double-buffered by BlockSpec.
    vmem_cap = _vmem_capacity_bytes()
    per_buffer_budget = min(16 * _MIB, vmem_cap // 8)

    tm = max(sublane, (per_buffer_budget // max(bytes_per_row, 1)) // sublane * sublane)
    tm = min(tm, n_pad)
    if max_block_rows is not None:
        tm = max(sublane, min(tm, (max_block_rows // sublane) * sublane))

    # v7x megacore: if everything fits one block but each chunk would still be a
    # multi-MiB tile, split so the "parallel" batch axis spans both TensorCores.
    MIN_TILE_BYTES = 1 * _MIB
    if tm >= n_pad and max_block_rows is None:
        for k in (8, 4, 2):
            tm_k = _round_up(pl.cdiv(n, k), sublane)
            if tm_k < n_pad and tm_k * bytes_per_row >= MIN_TILE_BYTES:
                tm = tm_k
                break

    num_blocks = pl.cdiv(n, tm)

    # VMEM fit guard (double-buffered logits + targets + outputs) + explicit limit.
    needed = 2 * tm * bytes_per_row + 2 * tm * 4 + 2 * 128 * 4
    safe_cap = (vmem_cap * 3) // 4
    if needed > safe_cap:
        # TODO(synk): vocab-scale C needs a class-axis grid dim with online-LSE
        # accumulation; refuse to compile into a VMEM overrun for now.
        raise ValueError(
            f"FocalLoss tile needs {needed} B VMEM > safe budget {safe_cap} B; "
            f"reduce the class count or add class-axis tiling.")
    vmem_limit = int(min(safe_cap, max(32 * _MIB, needed + 4 * _MIB)))

    partials = pl.pallas_call(
        functools.partial(_ce_partial_kernel, n_rows=n, block_rows=tm),
        out_shape=jax.ShapeDtypeStruct((num_blocks, 1, 128), jnp.float32),
        grid=(num_blocks,),
        in_specs=[
            pl.BlockSpec((tm, c), lambda i: (i, 0)),     # logits row tile (native dtype)
            pl.BlockSpec((tm, 1), lambda i: (i, 0)),     # targets column (int32)
        ],
        out_specs=pl.BlockSpec((1, 1, 128), lambda i: (i, 0, 0)),
        compiler_params=pltpu.CompilerParams(
            dimension_semantics=("parallel",),
            vmem_limit_bytes=vmem_limit),
    )(logits, target2d)

    # Finalize on scalars: batch-mean CE, then the focal transform (matches the
    # PyTorch module: focal applied to the scalar mean CE, not per-example).
    logp = jnp.sum(partials[:, 0, 0]) / jnp.float32(n)
    p = jnp.exp(-logp)
    d = jnp.maximum(1.0 - p, 0.0)      # clamp: tgt_logit can exceed lse by an ulp
    mod = d * d if gamma == 2 else d ** gamma
    return mod * logp


def _focal_loss_ref(logits, target, gamma=2.0):
    # Pure-JAX reference mirroring torch.nn.CrossEntropyLoss + focal transform.
    logits32 = logits.astype(jnp.float32)
    logp_per = jax.nn.logsumexp(logits32, axis=-1) - jnp.take_along_axis(
        logits32, target[:, None].astype(jnp.int32), axis=-1)[:, 0]
    logp = jnp.mean(logp_per)
    p = jnp.exp(-logp)
    return (1.0 - p) ** gamma * logp


if __name__ == "__main__":
    key = jax.random.PRNGKey(0)
    k1, k2, k3, k4, k5, k6 = jax.random.split(key, 6)

    # Case 1: batch not a multiple of 8 (tail-row masking inside a single block).
    N1, C1 = 20, 32
    logits1 = jax.random.normal(k1, (N1, C1), dtype=jnp.float32)
    target1 = jax.random.randint(k2, (N1,), 0, C1, dtype=jnp.int32)
    out1 = jax.block_until_ready(focal_loss(logits1, target1, gamma=2.0))
    ref1 = _focal_loss_ref(logits1, target1, gamma=2.0)
    assert jnp.allclose(out1, ref1, rtol=1e-5, atol=1e-5), (out1, ref1)

    # Case 2: multi-block grid (forced small row tile) with a ragged last block.
    N2, C2 = 50, 16
    logits2 = jax.random.normal(k3, (N2, C2), dtype=jnp.float32)
    target2 = jax.random.randint(k4, (N2,), 0, C2, dtype=jnp.int32)
    out2 = jax.block_until_ready(
        focal_loss(logits2, target2, gamma=2.0, max_block_rows=16))
    ref2 = _focal_loss_ref(logits2, target2, gamma=2.0)
    assert jnp.allclose(out2, ref2, rtol=1e-5, atol=1e-5), (out2, ref2)

    # Case 3: bf16 logits streamed natively (sublane multiple of 16, upcast
    # before the subtraction inside the kernel).
    N3, C3 = 40, 64
    logits3 = jax.random.normal(k5, (N3, C3), dtype=jnp.float32).astype(jnp.bfloat16)
    target3 = jax.random.randint(k6, (N3,), 0, C3, dtype=jnp.int32)
    out3 = jax.block_until_ready(focal_loss(logits3, target3, gamma=2.0))
    ref3 = _focal_loss_ref(logits3, target3, gamma=2.0)
    assert jnp.allclose(out3, ref3, rtol=1e-3, atol=1e-3), (out3, ref3)

    print("KERNEL_OK")
</pallas_src>

<mosaic_0001>
module attributes {stable_mosaic.version = 11 : i64} {
  func.func @_ce_partial_kernel(%arg0: i32, %arg1: memref<24x32xf32, #tpu.memory_space<vmem>>, %arg2: memref<24x1xi32, #tpu.memory_space<vmem>>, %arg3: memref<1x1x128xf32, #tpu.memory_space<vmem>>) attributes {dimension_semantics = [#tpu.dimension_semantics<parallel>], iteration_bounds = array<i64: 1>, scalar_prefetch = 0 : i64, scratch_operands = 0 : i64, tpu.core_type = #tpu.core_type<tc>, window_params = [{transform_indices = @transform_0, window_bounds = array<i64: 24, 32>}, {transform_indices = @transform_1, window_bounds = array<i64: 24, 1>}, {transform_indices = @transform_2, window_bounds = array<i64: 1, 1, 128>}]} {
    %c0 = arith.constant 0 : index
    %c0_0 = arith.constant 0 : index
    %0 = vector.load %arg1[%c0, %c0_0] : memref<24x32xf32, #tpu.memory_space<vmem>>, vector<24x32xf32>
    %c0_1 = arith.constant 0 : index
    %c0_2 = arith.constant 0 : index
    %1 = vector.load %arg2[%c0_1, %c0_2] : memref<24x1xi32, #tpu.memory_space<vmem>>, vector<24x1xi32>
    %cst = arith.constant dense<0xFF800000> : vector<24xf32>
    %2 = vector.multi_reduction <maximumf>, %0, %cst [1] : vector<24x32xf32> to vector<24xf32>
    %3 = vector.shape_cast %2 : vector<24xf32> to vector<24x1xf32>
    %4 = vector.broadcast %3 : vector<24x1xf32> to vector<24x32xf32>
    %5 = arith.subf %0, %4 : vector<24x32xf32>
    %6 = math.exp %5 : vector<24x32xf32>
    %cst_3 = arith.constant dense<0.000000e+00> : vector<24xf32>
    %7 = vector.multi_reduction <add>, %6, %cst_3 [1] : vector<24x32xf32> to vector<24xf32>
    %8 = vector.shape_cast %7 : vector<24xf32> to vector<24x1xf32>
    %9 = tpu.iota {dimensions = array<i32: 1>} : vector<24x32xi32>
    %10 = vector.broadcast %1 : vector<24x1xi32> to vector<24x32xi32>
    %11 = arith.cmpi eq, %9, %10 : vector<24x32xi32>
    %cst_4 = arith.constant 0.000000e+00 : f32
    %12 = vector.broadcast %cst_4 : f32 to vector<24x32xf32>
    %13 = arith.select %11, %5, %12 : vector<24x32xi1>, vector<24x32xf32>
    %cst_5 = arith.constant dense<0.000000e+00> : vector<24xf32>
    %14 = vector.multi_reduction <add>, %13, %cst_5 [1] : vector<24x32xf32> to vector<24xf32>
    %15 = vector.shape_cast %14 : vector<24xf32> to vector<24x1xf32>
    %16 = math.log %8 : vector<24x1xf32>
    %17 = arith.subf %16, %15 : vector<24x1xf32>
    %c24_i32 = arith.constant 24 : i32
    %18 = arith.muli %arg0, %c24_i32 : i32
    %19 = tpu.iota {dimensions = array<i32: 0>} : vector<24x1xi32>
    %20 = vector.broadcast %18 : i32 to vector<24x1xi32>
    %21 = arith.addi %20, %19 : vector<24x1xi32>
    %c20_i32 = arith.constant 20 : i32
    %22 = vector.broadcast %c20_i32 : i32 to vector<24x1xi32>
    %23 = arith.cmpi slt, %21, %22 : vector<24x1xi32>
    %cst_6 = arith.constant 0.000000e+00 : f32
    %24 = vector.broadcast %cst_6 : f32 to vector<24x1xf32>
    %25 = arith.select %23, %17, %24 : vector<24x1xi1>, vector<24x1xf32>
    %26 = vector.shape_cast %25 : vector<24x1xf32> to vector<1x24x1xf32>
    %cst_7 = arith.constant dense<0.000000e+00> : vector<1xf32>
    %27 = vector.multi_reduction <add>, %26, %cst_7 [1, 2] : vector<1x24x1xf32> to vector<1xf32>
    %28 = vector.shape_cast %27 : vector<1xf32> to vector<1x1x1xf32>
    %29 = vector.extract %28[0, 0, 0] : f32 from vector<1x1x1xf32>
    %30 = vector.broadcast %29 : f32 to vector<1x1x128xf32>
    %c0_8 = arith.constant 0 : index
    %c0_9 = arith.constant 0 : index
    %c0_10 = arith.constant 0 : index
    %31 = vector.load %arg3[%c0_8, %c0_9, %c0_10] : memref<1x1x128xf32, #tpu.memory_space<vmem>>, vector<1x1x128xf32>
    tpu.vector_store %arg3[%c0_8, %c0_9, %c0_10], %30 {strides = array<i32>} : memref<1x1x128xf32, #tpu.memory_space<vmem>>, vector<1x1x128xf32>,
    return
  }
  func.func @transform_0(%arg0: i32) -> (i32, i32) {
    %c0_i32 = arith.constant 0 : i32
    %c0_i32_0 = arith.constant 0 : i32
    return %arg0, %c0_i32 : i32, i32
  }
  func.func @transform_1(%arg0: i32) -> (i32, i32) {
    %c0_i32 = arith.constant 0 : i32
    %c0_i32_0 = arith.constant 0 : i32
    return %arg0, %c0_i32 : i32, i32
  }
  func.func @transform_2(%arg0: i32) -> (i32, i32, i32) {
    %c0_i32 = arith.constant 0 : i32
    %c0_i32_0 = arith.constant 0 : i32
    %c0_i32_1 = arith.constant 0 : i32
    return %arg0, %c0_i32, %c0_i32_0 : i32, i32, i32
  }
}

</mosaic_0001>

<bundles_post_ra>
// kernel: tpu_custom_call.1
= control target key start
LH: loop header
LB: loop body
LE: loop exit
PB: predicated region body
PF: predicated region fallthrough
CT: control target
= control target key end

     0   :  { %vm18_vm0 = vcmask 261120   ;;  %v169_v5 = vmov 0   ;;  %s225_s0 = inlined_call_operand.vmem [shape: f32[20,32], index: 0, kind: input, shape index: {}]   ;;  %s226_s1 = inlined_call_operand.vmem [shape: s32[20,1], index: 1, kind: input, shape index: {}]   ;;  %s227_s2 = inlined_call_operand.hbm [shape: f32[1,1,128], index: 2, kind: output, shape index: {}]  }
   0x1   :  { %v14_v0 = vld [vmem:[%s225_s0 + $0x10] sm:$0xff]  ;;  %v12_v1 = vld [vmem:[%s225_s0] sm:$0xff]  ;;  %v13_v2 = vld [vmem:[%s225_s0 + $0x8] sm:$0xff]  ;;  %131 = vset.pattern.permute.xlu1 %v169_v5  ;;  %132 = vset.pattern.permute.xlu0 %v169_v5 }
   0x2   :  { %v25_v3 = vsel %vm18_vm0, %v14_v0, -inf  ;;  %v19_v4 = vsel %vm18_vm0, %v12_v1, -inf }
   0x3   :  { %26 = vmax.xlane.f32.xlu1 %v25_v3  ;;  %20 = vmax.xlane.f32.xlu0 %v19_v4 }
   0x4   :  { %7 = vsyncpa [#allocation3], 0  ;;  %v22_v6 = vsel %vm18_vm0, %v13_v2, -inf  ;;  %v15_v7 = vld [vmem:[%s226_s1] sm:$0xff]  ;;  %v17_v8 = vld [vmem:[%s226_s1 + $0x10] sm:$0xff]  ;;  %v46_v19 = vlaneseq  ;;  %vm96_vm4 = vcmask 7168  }
   0x5   :  { %v16_v9 = vld [vmem:[%s226_s1 + $0x8] sm:$0xff]  ;;  %s170_s1 = smov [#allocation2]  }
   0x6   :  { %v47_v21 = vand.u32 127, %v46_v19  ;;  %v83_v40 = vshrl.u32 %v46_v19, 7  ;;  %s119_s20 = sshll.u32 %s170_s1, 4  ;;  %s120_s20 = int_to_ptr.vmem [resolvable:$true] %s119_s20 }
   0x7   :  { %23 = vmax.xlane.f32.xlu0 %v22_v6  ;;  %s145_s22 = scalar_lea.vmem %s120_s20, 16  ;;  %s149_s23 = scalar_lea.vmem %s120_s20, 32 }
   0x8   :  { %v85_v44 = vadd.s32 16, %v83_v40  ;;  %p146_p0 = scmp.ne.s32.totalorder %s120_s20, %s145_s22  ;;  %p150_p1 = scmp.lt.s32.totalorder %s120_s20, %s120_s20 }
   0x9   :  { %p151_p2 = scmp.lt.s32.totalorder %s149_s23, %s145_s22 }
   0xa   :  { %vm92_vm5 = vcmp.lt.s32.totalorder %v85_v44, 20 }
   0xb   :  { %p152_p3 = por %p151_p2, %p150_p1 }
   0xd   :  { %p153_p4 = pnand %p152_p3, %p146_p0 }
  0x14   :  { %49 = vperm.xlu1 %131, %v15_v7  }
  0x18   :  { %55 = vperm.xlu1 %131, %v17_v8  }
  0x1d   :  { %52 = vperm.xlu0 %132, %v16_v9  }
  0x90   :  { %v27_v10 = vpop.xlane.xlu1 %26  ;;  %v21_v11 = vpop.xlane.xlu0 %20 }
  0x91   :  { %v30_v12 = vsub.f32 %v14_v0, %v27_v10  ;;  %v28_v13 = vsub.f32 %v12_v1, %v21_v11 }
  0x93   :  { %v35_v14 = vmul.f32 1.442695, %v30_v12  ;;  %v31_v15 = vmul.f32 1.442695, %v28_v13 }
  0x94   :  { %v24_v16 = vpop.xlane.xlu0 %23  ;;  %v50_v23 = vpop.permute.xlu1 %49 }
  0x95   :  { %133 = vpow2.f32 %v35_v14  ;;  %v29_v17 = vsub.f32 %v13_v2, %v24_v16  ;;  %vm57_vm1 = vcmp.eq.s32.totalorder %v47_v21, %v50_v23 }
  0x96   :  { %135 = vpow2.f32 %v31_v15  ;;  %v60_v29 = vsel %vm57_vm1, %v28_v13, 0.0 }
  0x97   :  { %v33_v18 = vmul.f32 1.442695, %v29_v17  ;;  %v63_v31 = vsel %vm18_vm0, %v60_v29, 0.0 }
  0x98   :  { %v56_v30 = vpop.permute.xlu1 %55 }
  0x99   :  { %137 = vpow2.f32 %v33_v18  ;;  %vm59_vm3 = vcmp.eq.s32.totalorder %v47_v21, %v56_v30 }
  0x9a   :  { %v62_v34 = vsel %vm59_vm3, %v30_v12, 0.0 }
  0x9b   :  { %v69_v35 = vsel %vm18_vm0, %v62_v34, 0.0 }
  0x9c   :  { %v53_v27 = vpop.permute.xlu0 %52 }
  0x9d   :  { %vm58_vm2 = vcmp.eq.s32.totalorder %v47_v21, %v53_v27 }
  0x9e   :  { %v61_v32 = vsel %vm58_vm2, %v29_v17, 0.0 }
  0x9f   :  { %v134_v20 = vpop.eup %133  ;;  %v66_v33 = vsel %vm18_vm0, %v61_v32, 0.0 }
  0xa0   :  { %v136_v22 = vpop.eup %135  ;;  %v43_v26 = vsel %vm18_vm0, %v134_v20, 0.0 }
  0xa1   :  { %v37_v24 = vsel %vm18_vm0, %v136_v22, 0.0 }
  0xa2   :  { %38 = vadd.xlane.f32.xlu1 %v37_v24 }
  0xa3   :  { %v138_v25 = vpop.eup %137 }
  0xa4   :  { %v40_v28 = vsel %vm18_vm0, %v138_v25, 0.0 }
  0xa5   :  { %41 = vadd.xlane.f32.xlu0 %v40_v28 }
  0xa6   :  { %44 = vadd.xlane.f32.xlu1 %v43_v26 }
  0xaa   :  { %64 = vadd.xlane.f32.xlu1 %v63_v31 }
  0xae   :  { %67 = vadd.xlane.f32.xlu1 %v66_v33 }
  0xb2   :  { %70 = vadd.xlane.f32.xlu1 %v69_v35 }
 0x12f   :  { %v39_v36 = vpop.xlane.xlu1 %38 }
 0x130   :  { %139 = vlog2.f32 %v39_v36 }
 0x132   :  { %v42_v37 = vpop.xlane.xlu0 %41 }
 0x133   :  { %v45_v38 = vpop.xlane.xlu1 %44  ;;  %141 = vlog2.f32 %v42_v37 }
 0x134   :  { %143 = vlog2.f32 %v45_v38 }
 0x137   :  { %v65_v39 = vpop.xlane.xlu1 %64 }
 0x13a   :  { %v140_v41 = vpop.eup %139 }
 0x13b   :  { %v73_v42 = vmul.f32 0.6931472, %v140_v41  ;;  %v68_v43 = vpop.xlane.xlu1 %67 }
 0x13d   :  { %v142_v45 = vpop.eup %141  ;;  %v78_v47 = vsub.f32 %v73_v42, %v65_v39 }
 0x13e   :  { %v144_v46 = vpop.eup %143  ;;  %v75_v48 = vmul.f32 0.6931472, %v142_v45 }
 0x13f   :  { %v77_v49 = vmul.f32 0.6931472, %v144_v46  ;;  %v71_v50 = vpop.xlane.xlu1 %70  ;;  %v97_v53 = vsel %vm96_vm4, %v78_v47, 0.0 }
 0x140   :  { %v79_v51 = vsub.f32 %v75_v48, %v68_v43 }
 0x141   :  { %v80_v52 = vsub.f32 %v77_v49, %v71_v50 }
 0x142   :  { %v98_v54 = vsel %vm96_vm4, %v79_v51, 0.0 }
 0x143   :  { %v95_v55 = vsel %vm92_vm5, %v80_v52, 0.0  ;;  %v99_v56 = vadd.f32 %v98_v54, %v97_v53 }
 0x144   :  { %v100_v57 = vsel %vm96_vm4, %v95_v55, 0.0 }
 0x145   :  { %v101_v58 = vadd.f32 %v100_v57, %v99_v56 }
 0x147   :  { %102 = vadd.xlane.f32.xlu1 %v101_v58 }
 0x1d4   :  { %v103_v59 = vpop.xlane.xlu1 %102 }
 0x1d5   :  { %v104_v60 = vrot.slane %v103_v59, 4 }
 0x1d7   :  { %v105_v61 = vadd.f32 %v104_v60, %v103_v59 }
 0x1d9   :  { %v106_v62 = vrot.slane %v105_v61, 2 }
 0x1db   :  { %v107_v63 = vadd.f32 %v106_v62, %v105_v61 }
 0x1dd   :  { %v108_v0 = vrot.slane %v107_v63, 1 }
 0x1df   :  { %v109_v1 = vadd.f32 %v108_v0, %v107_v63 }
 0x1e1   :  { %127 = vpush %v109_v1 }
 0x212   :  { %s128_s21 = spop %127 }
 0x213   :  { %v111_v2 = vstv %s128_s21 }
 0x214   :  { %112 = vst [vmem:[#allocation2] sm:$0x1] %v111_v2 }
 0x215   :  { %156 = shalt.err (!%p153_p4)
}
 0x216   :  { %s157_s26 = scalar_lea.hbm %s227_s2, 16 }
 0x217   :  { %p158_p5 = scmp.ne.s32.totalorder %s227_s2, %s157_s26  ;;  %p161_p6 = scmp.lt.u32.totalorder %s157_s26, %s227_s2 }
 0x219   :  { %p163_p7 = pnand %p161_p6, %p158_p5 }
 0x21b   :  { %166 = shalt.err (!%p163_p7)
}
 0x21c   :  { %122 = dma.vmem_to_hbm [thread:$0]  %s120_s20, 16, %s227_s2, [#allocation3]  }
 0x21d   :  { %167 = dma.done.wait [#allocation3], 16  }
 0x21e   :  { %168 = vsyncadd [#allocation3], 4294967280 }
 0x21f   :  { %126 = vsyncpa [#allocation3], 1 }

</bundles_post_ra>
